<compile_context>
chip_gen: v5e
topology: v5e:2x2
jax: 0.10.0
libtpu: 0.0.40
codegen_flags: <defaults>
</compile_context>

<pallas_src>
import jax
import jax.numpy as jnp
from jax.experimental import pallas as pl
from jax.experimental.pallas import tpu as pltpu


def _round_up(x, m):
    return ((x + m - 1) // m) * m


def _cdiv(a, b):
    return -(-a // b)


def _make_fusion_kernel(n_branches):
    """Build a kernel closed over the (static) number of branches."""

    def kernel(*refs):
        w_ref = refs[0]                       # (B, C, C) folded conv+BN weight
        bias_ref = refs[1]                    # (B, C, 1) folded BN bias
        x_refs = refs[2:2 + n_branches]       # each (1, C, t_hw)
        o_ref = refs[2 + n_branches]          # (1, C, t_hw)

        acc = None
        for b in range(n_branches):           # static loop, unrolled at trace
            x = x_refs[b][0]                   # (C, t_hw)
            y = jnp.dot(w_ref[b], x, preferred_element_type=jnp.float32)
            y = y + bias_ref[b]                # (C, 1) broadcast over lanes
            y = y * jax.nn.sigmoid(y)          # SiLU
            acc = y if acc is None else acc + y

        o_ref[0] = acc.astype(o_ref.dtype)

    return kernel


def _vmem_capacity_bytes():
    """Per-core physical VMEM; conservative fallback if the query is absent."""
    try:
        return int(pltpu.get_tpu_info().vmem_capacity_bytes)
    except Exception:
        return 64 * 1024 * 1024   # v7x per-TC size: safe lower bound


def _choose_spatial_tile(HW, N, C, B, itemsize, vmem_cap):
    """Largest lane tile that fits ~45% of VMEM with double-buffered streams."""
    # Per-lane VMEM cost: B input streams + 1 output stream, double-buffered.
    per_lane = 2 * (B + 1) * C * itemsize
    # Folded weights/bias (f32) stay resident; charge a double buffer
    # conservatively (we do not force single-buffering in the BlockSpec).
    fixed = 2 * (B * C * C + B * C) * 4
    budget = int(vmem_cap * 0.45)
    t_max = (budget - fixed) // max(per_lane, 1)
    t_max = max(128, min(int(t_max), 8192))    # cap: diminishing returns past ~8k

    if HW <= t_max:
        t_hw = HW                              # full row: block == full lane dim
    else:
        t_hw = (t_max // 128) * 128            # 128-multiple; last block may be partial

    n_tiles = _cdiv(HW, t_hw)

    # Megacore (v7x: 2 TensorCores) -- make sure the grid exposes >= 2 steps
    # when the spatial axis is large enough to split without hurting bandwidth.
    if N * n_tiles < 2 and HW >= 256:
        half = _round_up(_cdiv(HW, 2), 128)
        if half < HW:
            t_hw = half
            n_tiles = _cdiv(HW, t_hw)

    return t_hw, n_tiles


def fusion_forward(xs, conv_w, bn_gamma, bn_beta, bn_mean, bn_var, eps=1e-5):
    """xs: list of (N, C, H, W) arrays (all same shape).
    conv_w: (B, C, C) 1x1 conv weights (out_ch, in_ch) per branch.
    bn_*:   (B, C) BatchNorm2d params / running stats per branch.
    Returns (N, C, H, W)."""
    B = len(xs)
    N, C, H, W = xs[0].shape
    HW = H * W
    dtype = xs[0].dtype
    itemsize = jnp.dtype(dtype).itemsize

    # Fold BatchNorm (eval mode) into the 1x1 conv (NCHW / "w @ x" form):
    #   y[o, hw] = scale[o] * sum_c W[o, c] x[c, hw] + (beta[o] - mean[o]*scale[o])
    scale = bn_gamma / jnp.sqrt(bn_var + eps)                          # (B, C)
    w_eff = (conv_w * scale[:, :, None]).astype(jnp.float32)          # (B, C, C)
    b_eff = (bn_beta - bn_mean * scale)[:, :, None].astype(jnp.float32)  # (B, C, 1)

    # NCHW -> (N, C, HW): pure reshape, no data movement, no padding.
    x3 = [x.reshape(N, C, HW) for x in xs]

    vmem_cap = _vmem_capacity_bytes()
    t_hw, n_tiles = _choose_spatial_tile(HW, N, C, B, itemsize, vmem_cap)
    grid = (N, n_tiles)

    x_spec = pl.BlockSpec((1, C, t_hw), lambda n, m: (n, 0, m))
    w_spec = pl.BlockSpec((B, C, C), lambda n, m: (0, 0, 0))      # resident
    bias_spec = pl.BlockSpec((B, C, 1), lambda n, m: (0, 0, 0))   # resident
    out_spec = pl.BlockSpec((1, C, t_hw), lambda n, m: (n, 0, m))

    # Explicit scoped-VMEM limit: above the 16/32 MiB defaults, below physical
    # on every generation (v7x's 64 MiB included).
    vmem_limit = min(int(vmem_cap * 0.70), 100 * 1024 * 1024)

    out = pl.pallas_call(
        _make_fusion_kernel(B),
        out_shape=jax.ShapeDtypeStruct((N, C, HW), dtype),
        grid_spec=pltpu.PrefetchScalarGridSpec(
            num_scalar_prefetch=0,
            grid=grid,
            in_specs=[w_spec, bias_spec] + [x_spec] * B,
            out_specs=out_spec,
        ),
        compiler_params=pltpu.CompilerParams(
            dimension_semantics=("parallel", "parallel"),
            vmem_limit_bytes=vmem_limit,
        ),
    )(w_eff, b_eff, *x3)

    return out.reshape(N, C, H, W)


def fusion_reference(xs, conv_w, bn_gamma, bn_beta, bn_mean, bn_var, eps=1e-5):
    """Plain-JAX reference of the same math for a correctness check."""
    outs = []
    for i, x in enumerate(xs):
        xr = jnp.transpose(x, (0, 2, 3, 1))                 # NHWC
        y = jnp.einsum("nhwc,oc->nhwo", xr, conv_w[i])      # 1x1 conv
        scale = bn_gamma[i] / jnp.sqrt(bn_var[i] + eps)
        y = y * scale + (bn_beta[i] - bn_mean[i] * scale)
        y = y * jax.nn.sigmoid(y)                           # SiLU
        outs.append(jnp.transpose(y, (0, 3, 1, 2)))         # NCHW
    return jnp.sum(jnp.stack(outs, axis=0), axis=0)


if __name__ == "__main__":
    key = jax.random.PRNGKey(0)
    N, C, H, W = 2, 4, 16, 16
    inc_list = [C, C, C]          # branches must share shape (torch.stack)
    B = len(inc_list)

    keys = jax.random.split(key, 2 + 5)
    xs = [
        jax.random.normal(k, (N, C, H, W), dtype=jnp.float32)
        for k in jax.random.split(keys[0], B)
    ]
    conv_w = 0.2 * jax.random.normal(keys[1], (B, C, C), dtype=jnp.float32)
    bn_gamma = 1.0 + 0.1 * jax.random.normal(keys[2], (B, C), dtype=jnp.float32)
    bn_beta = 0.1 * jax.random.normal(keys[3], (B, C), dtype=jnp.float32)
    bn_mean = 0.05 * jax.random.normal(keys[4], (B, C), dtype=jnp.float32)
    bn_var = jnp.abs(1.0 + 0.1 * jax.random.normal(keys[5], (B, C), dtype=jnp.float32))

    out = fusion_forward(xs, conv_w, bn_gamma, bn_beta, bn_mean, bn_var)
    out = jax.block_until_ready(out)

    ref = fusion_reference(xs, conv_w, bn_gamma, bn_beta, bn_mean, bn_var)
    assert out.shape == (N, C, H, W)
    assert jnp.allclose(out, ref, atol=1e-4, rtol=1e-4), "mismatch vs reference"

    print("KERNEL_OK")
</pallas_src>

<mosaic_0001>
module attributes {stable_mosaic.version = 11 : i64} {
  func.func @kernel(%arg0: i32, %arg1: i32, %arg2: memref<3x4x4xf32, #tpu.memory_space<vmem>>, %arg3: memref<3x4x1xf32, #tpu.memory_space<vmem>>, %arg4: memref<1x4x256xf32, #tpu.memory_space<vmem>>, %arg5: memref<1x4x256xf32, #tpu.memory_space<vmem>>, %arg6: memref<1x4x256xf32, #tpu.memory_space<vmem>>, %arg7: memref<1x4x256xf32, #tpu.memory_space<vmem>>) attributes {dimension_semantics = [#tpu.dimension_semantics<parallel>, #tpu.dimension_semantics<parallel>], iteration_bounds = array<i64: 2, 1>, scalar_prefetch = 0 : i64, scratch_operands = 0 : i64, tpu.core_type = #tpu.core_type<tc>, window_params = [{pipeline_mode = #tpu.pipeline_mode<synchronous>, transform_indices = @transform_0, window_bounds = array<i64: 3, 4, 4>}, {pipeline_mode = #tpu.pipeline_mode<synchronous>, transform_indices = @transform_1, window_bounds = array<i64: 3, 4, 1>}, {transform_indices = @transform_2, window_bounds = array<i64: 1, 4, 256>}, {transform_indices = @transform_3, window_bounds = array<i64: 1, 4, 256>}, {transform_indices = @transform_4, window_bounds = array<i64: 1, 4, 256>}, {transform_indices = @transform_5, window_bounds = array<i64: 1, 4, 256>}]} {
    %c0 = arith.constant 0 : index
    %c0_0 = arith.constant 0 : index
    %c0_1 = arith.constant 0 : index
    %0 = vector.load %arg4[%c0, %c0_0, %c0_1] : memref<1x4x256xf32, #tpu.memory_space<vmem>>, vector<1x4x256xf32>
    %1 = vector.shape_cast %0 : vector<1x4x256xf32> to vector<4x256xf32>
    %c0_2 = arith.constant 0 : index
    %c0_3 = arith.constant 0 : index
    %c0_4 = arith.constant 0 : index
    %2 = vector.load %arg2[%c0_2, %c0_3, %c0_4] : memref<3x4x4xf32, #tpu.memory_space<vmem>>, vector<1x4x4xf32>
    %3 = vector.shape_cast %2 : vector<1x4x4xf32> to vector<4x4xf32>
    %cst = arith.constant dense<0.000000e+00> : vector<4x256xf32>
    %4 = tpu.matmul %3, %1, %cst {dimension_numbers = #tpu.dot_dimension_numbers<[1], [0], [0], [1], [0, 0, 1, 1], [], []>} : vector<4x4xf32>, vector<4x256xf32>, vector<4x256xf32> -> vector<4x256xf32>
    %c0_5 = arith.constant 0 : index
    %c0_6 = arith.constant 0 : index
    %c0_7 = arith.constant 0 : index
    %5 = vector.load %arg3[%c0_5, %c0_6, %c0_7] : memref<3x4x1xf32, #tpu.memory_space<vmem>>, vector<1x4x1xf32>
    %6 = vector.shape_cast %5 : vector<1x4x1xf32> to vector<4x1xf32>
    %7 = vector.broadcast %6 : vector<4x1xf32> to vector<4x256xf32>
    %8 = arith.addf %4, %7 : vector<4x256xf32>
    %9 = arith.negf %8 : vector<4x256xf32>
    %10 = math.exp %9 : vector<4x256xf32>
    %cst_8 = arith.constant 1.000000e+00 : f32
    %11 = vector.broadcast %cst_8 : f32 to vector<4x256xf32>
    %12 = arith.addf %11, %10 : vector<4x256xf32>
    %13 = arith.divf %11, %12 : vector<4x256xf32>
    %14 = arith.mulf %8, %13 : vector<4x256xf32>
    %c0_9 = arith.constant 0 : index
    %c0_10 = arith.constant 0 : index
    %c0_11 = arith.constant 0 : index
    %15 = vector.load %arg5[%c0_9, %c0_10, %c0_11] : memref<1x4x256xf32, #tpu.memory_space<vmem>>, vector<1x4x256xf32>
    %16 = vector.shape_cast %15 : vector<1x4x256xf32> to vector<4x256xf32>
    %c1 = arith.constant 1 : index
    %c0_12 = arith.constant 0 : index
    %c0_13 = arith.constant 0 : index
    %17 = vector.load %arg2[%c1, %c0_12, %c0_13] : memref<3x4x4xf32, #tpu.memory_space<vmem>>, vector<1x4x4xf32>
    %18 = vector.shape_cast %17 : vector<1x4x4xf32> to vector<4x4xf32>
    %cst_14 = arith.constant dense<0.000000e+00> : vector<4x256xf32>
    %19 = tpu.matmul %18, %16, %cst_14 {dimension_numbers = #tpu.dot_dimension_numbers<[1], [0], [0], [1], [0, 0, 1, 1], [], []>} : vector<4x4xf32>, vector<4x256xf32>, vector<4x256xf32> -> vector<4x256xf32>
    %c1_15 = arith.constant 1 : index
    %c0_16 = arith.constant 0 : index
    %c0_17 = arith.constant 0 : index
    %20 = vector.load %arg3[%c1_15, %c0_16, %c0_17] : memref<3x4x1xf32, #tpu.memory_space<vmem>>, vector<1x4x1xf32>
    %21 = vector.shape_cast %20 : vector<1x4x1xf32> to vector<4x1xf32>
    %22 = vector.broadcast %21 : vector<4x1xf32> to vector<4x256xf32>
    %23 = arith.addf %19, %22 : vector<4x256xf32>
    %24 = arith.negf %23 : vector<4x256xf32>
    %25 = math.exp %24 : vector<4x256xf32>
    %cst_18 = arith.constant 1.000000e+00 : f32
    %26 = vector.broadcast %cst_18 : f32 to vector<4x256xf32>
    %27 = arith.addf %26, %25 : vector<4x256xf32>
    %28 = arith.divf %26, %27 : vector<4x256xf32>
    %29 = arith.mulf %23, %28 : vector<4x256xf32>
    %30 = arith.addf %14, %29 : vector<4x256xf32>
    %c0_19 = arith.constant 0 : index
    %c0_20 = arith.constant 0 : index
    %c0_21 = arith.constant 0 : index
    %31 = vector.load %arg6[%c0_19, %c0_20, %c0_21] : memref<1x4x256xf32, #tpu.memory_space<vmem>>, vector<1x4x256xf32>
    %32 = vector.shape_cast %31 : vector<1x4x256xf32> to vector<4x256xf32>
    %c2 = arith.constant 2 : index
    %c0_22 = arith.constant 0 : index
    %c0_23 = arith.constant 0 : index
    %33 = vector.load %arg2[%c2, %c0_22, %c0_23] : memref<3x4x4xf32, #tpu.memory_space<vmem>>, vector<1x4x4xf32>
    %34 = vector.shape_cast %33 : vector<1x4x4xf32> to vector<4x4xf32>
    %cst_24 = arith.constant dense<0.000000e+00> : vector<4x256xf32>
    %35 = tpu.matmul %34, %32, %cst_24 {dimension_numbers = #tpu.dot_dimension_numbers<[1], [0], [0], [1], [0, 0, 1, 1], [], []>} : vector<4x4xf32>, vector<4x256xf32>, vector<4x256xf32> -> vector<4x256xf32>
    %c2_25 = arith.constant 2 : index
    %c0_26 = arith.constant 0 : index
    %c0_27 = arith.constant 0 : index
    %36 = vector.load %arg3[%c2_25, %c0_26, %c0_27] : memref<3x4x1xf32, #tpu.memory_space<vmem>>, vector<1x4x1xf32>
    %37 = vector.shape_cast %36 : vector<1x4x1xf32> to vector<4x1xf32>
    %38 = vector.broadcast %37 : vector<4x1xf32> to vector<4x256xf32>
    %39 = arith.addf %35, %38 : vector<4x256xf32>
    %40 = arith.negf %39 : vector<4x256xf32>
    %41 = math.exp %40 : vector<4x256xf32>
    %cst_28 = arith.constant 1.000000e+00 : f32
    %42 = vector.broadcast %cst_28 : f32 to vector<4x256xf32>
    %43 = arith.addf %42, %41 : vector<4x256xf32>
    %44 = arith.divf %42, %43 : vector<4x256xf32>
    %45 = arith.mulf %39, %44 : vector<4x256xf32>
    %46 = arith.addf %30, %45 : vector<4x256xf32>
    %c0_29 = arith.constant 0 : index
    %c0_30 = arith.constant 0 : index
    %c0_31 = arith.constant 0 : index
    %47 = vector.load %arg7[%c0_29, %c0_30, %c0_31] : memref<1x4x256xf32, #tpu.memory_space<vmem>>, vector<1x4x256xf32>
    %48 = vector.shape_cast %47 : vector<1x4x256xf32> to vector<4x256xf32>
    %49 = vector.shape_cast %46 : vector<4x256xf32> to vector<1x4x256xf32>
    tpu.vector_store %arg7[%c0_29, %c0_30, %c0_31], %49 {strides = array<i32>} : memref<1x4x256xf32, #tpu.memory_space<vmem>>, vector<1x4x256xf32>,
    return
  }
  func.func @transform_0(%arg0: i32, %arg1: i32) -> (i32, i32, i32) {
    %c0_i32 = arith.constant 0 : i32
    %c0_i32_0 = arith.constant 0 : i32
    %c0_i32_1 = arith.constant 0 : i32
    %c0_i32_2 = arith.constant 0 : i32
    return %c0_i32, %c0_i32_0, %c0_i32_1 : i32, i32, i32
  }
  func.func @transform_1(%arg0: i32, %arg1: i32) -> (i32, i32, i32) {
    %c0_i32 = arith.constant 0 : i32
    %c0_i32_0 = arith.constant 0 : i32
    %c0_i32_1 = arith.constant 0 : i32
    %c0_i32_2 = arith.constant 0 : i32
    return %c0_i32, %c0_i32_0, %c0_i32_1 : i32, i32, i32
  }
  func.func @transform_2(%arg0: i32, %arg1: i32) -> (i32, i32, i32) {
    %c0_i32 = arith.constant 0 : i32
    %c0_i32_0 = arith.constant 0 : i32
    return %arg0, %c0_i32, %arg1 : i32, i32, i32
  }
  func.func @transform_3(%arg0: i32, %arg1: i32) -> (i32, i32, i32) {
    %c0_i32 = arith.constant 0 : i32
    %c0_i32_0 = arith.constant 0 : i32
    return %arg0, %c0_i32, %arg1 : i32, i32, i32
  }
  func.func @transform_4(%arg0: i32, %arg1: i32) -> (i32, i32, i32) {
    %c0_i32 = arith.constant 0 : i32
    %c0_i32_0 = arith.constant 0 : i32
    return %arg0, %c0_i32, %arg1 : i32, i32, i32
  }
  func.func @transform_5(%arg0: i32, %arg1: i32) -> (i32, i32, i32) {
    %c0_i32 = arith.constant 0 : i32
    %c0_i32_0 = arith.constant 0 : i32
    return %arg0, %c0_i32, %arg1 : i32, i32, i32
  }
}

</mosaic_0001>

<bundles_post_ra>
// kernel: tpu_custom_call.1
= control target key start
LH: loop header
LB: loop body
LE: loop exit
PB: predicated region body
PF: predicated region fallthrough
CT: control target
= control target key end

     0   :  { %10 = vsyncpa [#allocation3], 0  ;;  %s1462_s0 = inlined_call_operand.hbm [shape: f32[3,4,4], index: 0, kind: input, shape index: {}]   ;;  %s1463_s1 = inlined_call_operand.vmem [shape: f32[3,4,1], index: 1, kind: input, shape index: {}]   ;;  %s1464_s2 = inlined_call_operand.vmem [shape: f32[2,4,256], index: 2, kind: input, shape index: {}]   ;;  %s1465_s3 = inlined_call_operand.hbm [shape: f32[2,4,256], index: 3, kind: input, shape index: {}]   ;;  %s1466_s4 = inlined_call_operand.hbm [shape: f32[2,4,256], index: 4, kind: input, shape index: {}]   ;;  %s1467_s5 = inlined_call_operand.hbm [shape: f32[2,4,256], index: 5, kind: output, shape index: {}]  }
   0x1   :  { %11 = vsyncpa [#allocation6], 0 }
   0x2   :  { %13 = vsyncpa [#allocation6 + $0x1], 0 }
   0x3   :  { %14 = vsyncpa [#allocation4], 0 }
   0x4   :  { %16 = vsyncpa [#allocation4 + $0x1], 0  ;;  %s1193_s18 = smov 0   ;;  %s1195_s19 = smov 0  }
   0x5   :  { %s1197_s20 = smov 0   ;;  %s1199_s21 = smov 0  }
   0x6   :  { %s1201_s22 = smov 0   ;;  %s1203_s23 = smov 0  }
   0x7 LB: > { %s1224_s24 = sadd.s32 4294967295, %s1157_s23   ;;  %s828_s25 = sadd.s32 4294967294, %s1157_s23   ;;  %s1157_s23 = sphi %s1203_s23, %s22_s23   ;;  %s1153_s22 = sphi %s1201_s22, %s1491_s22   ;;  %s1149_s21 = sphi %s1199_s21, %s1490_s21   ;;  %s1145_s20 = sphi %s1197_s20, %s1489_s20   ;;  %s1141_s19 = sphi %s1195_s19, %s1488_s19   ;;  %s1137_s18 = sphi %s1193_s18, %s1487_s18  }
   0x8   : > { %s34_s26 = sadd.s32 1, %s1153_s22  ;;  %s113_s27 = sadd.s32 1, %s1145_s20 }
   0x9   : > { %p36_p0 = scmp.ge.s32.totalorder %s34_s26, 2  ;;  %p120_p1 = scmp.ne.s32.totalorder %s1145_s20, %s1141_s19 }
   0xa   : > { %p121_p2 = scmp.eq.s32.totalorder %s1157_s23, 0  ;;  %p126_p3 = scmp.ne.s32.totalorder %s1141_s19, %s1137_s18 }
   0xb   : > { %s1493_s26 = smov (%p36_p0, %s34_s26), 0  ;;  %p180_p5 = scmp.eq.s32.totalorder %s1224_s24, 1 }
   0xc   : > { %1469 = sst [smem:[#allocation12_spill]] %s1493_s26  ;;  %p1236_p4 = por %p121_p2, %p120_p1 }
   0xd   : > { %s108_s29 = ssub.s32 %s1153_s22, %s1493_s26  ;;  %p186_p6 = scmp.eq.s32.totalorder %s828_s25, 1 }
   0xe   : > { %p111_p7 = scmp.eq.s32.totalorder %s108_s29, 0  ;;  %p1243_p8 = por %p180_p5, %p120_p1 }
   0xf   : > { %p1250_p9 = por %p186_p6, %p126_p3  ;;  %p831_p10 = scmp.ge.s32.totalorder %s1157_s23, 2 }
  0x10   : > { %s1255_s7 = scalar_select %p111_p7, %s1145_s20, %s113_s27  }
  0x11   : > { %p900_p11 = scmp.lt.s32.totalorder %s1157_s23, 2  ;;  %s236_s8 = sand.u32 1, %s1157_s23  }
  0x12   : > { %s238_s9 = sand.u32 1, %s1145_s20   ;;  %s870_s11 = sshll.u32 %s1153_s22, 3 }
  0x13   : > { %s832_s10 = sshll.u32 %s238_s9, 3  ;;  %s247_s14 = scalar_lea.hbm %s1465_s3, %s870_s11 }
  0x14   : > { %s240_s15 = scalar_lea.vmem [#allocation5], %s832_s10  ;;  %s249_s17 = sshll.u32 %s247_s14, 4  ;;  %s250_s17 = int_to_ptr.hbm [resolvable:$true] %s249_s17 }
  0x15   : > { %s251_s16 = sshll.u32 %s240_s15, 4  ;;  %p1267_p12 = pnand %p900_p11, %p1236_p4  ;;  %s252_s16 = int_to_ptr.vmem [resolvable:$true] %s251_s16 }
  0x16   : > { %s269_s9 = scalar_lea.hbm %s1466_s4, %s870_s11  ;;  %s237_s26 = scalar_lea.sflag [#allocation6], %s236_s8 }
  0x17   : > { %891 = dma.hbm_to_vmem [thread:$0]  (!%p1267_p12), %s250_s17, 128, %s252_s16, %s237_s26  }
  0x18   : > { %p127_p13 = scmp.eq.s32.totalorder %s1224_s24, 0  ;;  %p829_p0 = scmp.ge.s32.totalorder %s1157_s23, 1 }
  0x19   : > { %p193_p1 = scmp.lt.s32.totalorder %s1157_s23, 3  ;;  %s204_s14 = sshll.u32 %s1462_s0, 4  ;;  %s205_s14 = int_to_ptr.hbm [resolvable:$true] %s204_s14 }
  0x1a   : > { %p1284_p2 = por %p127_p13, %p126_p3  ;;  %s1159_s8 = smov [#allocation2]  }
  0x1b   : > { %p1291_p4 = pnand %p829_p0, %p193_p1  ;;  %s206_s11 = sshll.u32 %s1159_s8, 4  ;;  %s207_s11 = int_to_ptr.vmem [resolvable:$true] %s206_s11 }
  0x1c   : > { %s271_s16 = sshll.u32 %s269_s9, 4  ;;  %s262_s17 = scalar_lea.vmem [#allocation7], %s832_s10  ;;  %s272_s16 = int_to_ptr.hbm [resolvable:$true] %s271_s16 }
  0x1d   : > { %p884_p5 = pneg %p1291_p4  ;;  %s273_s27 = sshll.u32 %s262_s17, 4  ;;  %s274_s27 = int_to_ptr.vmem [resolvable:$true] %s273_s27 }
  0x1e   : > { %s1160_s29 = smov 64   ;;  %s1161_s12 = smov 4  }
  0x1f   : > { %p885_p3 = pnand %p884_p5, %p127_p13  ;;  %282 = sbr.rel (%p1291_p4) target bundleno = 240 (0xf0), region = 40 }
  0x20   : > { %894 = dma.hbm_to_vmem [thread:$0]  (!%p1267_p12), %s272_s16, 128, %s274_s27, %s237_s26  }
  0x21   : > { %887 = dma.hbm_to_vmem [thread:$0]  (!%p885_p3), %s205_s14, 192, %s207_s11, [#allocation3], %s1160_s29, %s1160_s29, %s1161_s12  }
  0x24   : > { %1124 = dma.done.wait (%p127_p13), [#allocation3], 192  }
  0x25   : > { %1126 = vsyncadd (%p127_p13), [#allocation3], 4294967104  ;;  %s289_s10 = sand.u32 1, %s1224_s24   ;;  %s291_s9 = sand.u32 1, %s1141_s19  }
  0x26   : > { %s1311_s13 = sshll.u32 %s291_s9, 3  ;;  %s290_s26 = scalar_lea.sflag [#allocation6], %s289_s10 }
  0x27   : > { %s293_s25 = scalar_lea.vmem [#allocation5], %s1311_s13 }
  0x28   : > { %1128 = dma.done.wait (%p1284_p2), %s290_s26, 256  }
  0x29   : > { %1130 = vsyncadd (%p1284_p2), %s290_s26, 4294967040  ;;  %p346_p6 = scmp.lt.s32.totalorder %s1149_s21, 1  ;;  %v1162_v0 = vmov 0   ;;  %v360_v2 = vld [vmem:[%s1463_s1] sm:$0xf]  ;;  %vm374_vm0 = vcmask 1043456  }
  0x2a   : > { %955 = vset.pattern.permute.xlu0 %v1162_v0  ;;  %956 = vset.pattern.permute.xlu1 %v1162_v0  ;;  %v858_v3 = vld [vmem:[%s1463_s1 + $0x8] sm:$0xf]  ;;  %v459_v4 = vld [vmem:[%s293_s25] sm:$0xff]  ;;  %vm370_vm1 = vcmask 31744   ;;  %v851_v6 = vld [vmem:[%s1463_s1 + $0x4] sm:$0xf] }
  0x2b   : > { %s347_s14 = scalar_select %p346_p6, %s1149_s21, 1  ;;  %363 = vperm.xlu0 %955, %v360_v2   ;;  %569 = vperm.xlu1 %956, %v858_v3   ;;  %v359_v5 = vld [vmem:[#allocation2] sm:$0xf]  ;;  %v461_v10 = vld [vmem:[#allocation2 + $0x4] sm:$0xf] }
  0x2c   : > { %s303_s10 = scalar_lea.vmem [#allocation7], %s1311_s13  ;;  %v564_v13 = vld [vmem:[#allocation2 + $0x8] sm:$0xf]  ;;  %s873_s26 = sshll.u32 %s1149_s21, 3 }
  0x2d   : > { %s872_s24 = sshll.u32 %s347_s14, 3  ;;  %v562_v9 = vld [vmem:[%s303_s10] sm:$0xff]  ;;  %s344_s21 = scalar_lea.vmem [#allocation8], %s1311_s13 }
  0x2e   : > { %s353_s11 = scalar_lea.vmem %s1464_s2, %s872_s24  ;;  %s685_s24 = scalar_lea.hbm %s1467_s5, %s873_s26 }
  0x2f   : > { %v358_v1 = vld [vmem:[%s353_s11] sm:$0xff]  ;;  %s687_s15 = sshll.u32 %s344_s21, 4  ;;  %s689_s8 = sshll.u32 %s685_s24, 4  ;;  %s688_s15 = int_to_ptr.vmem [resolvable:$true] %s687_s15  ;;  %s690_s8 = int_to_ptr.hbm [resolvable:$true] %s689_s8 }
  0x30   : > { %367 = vst [vmem:[#allocation1] ss:$2 sm:$0xff] %v358_v1  ;;  %s672_s11 = scalar_lea.sflag [#allocation4], %s291_s9  ;;  %s1085_s16 = sshra.s32 %s690_s8, 4  ;;  %s1086_s16 = int_to_ptr.hbm [resolvable:$true] %s1085_s16 }
  0x31   : > { %s1087_s17 = scalar_lea.hbm %s1086_s16, 8  ;;  %s1091_s27 = scalar_lea.hbm %s1467_s5, 16 }
  0x32   : > { %p1088_p7 = scmp.ne.s32.totalorder %s1086_s16, %s1087_s17  ;;  %p1092_p13 = scmp.lt.s32.totalorder %s1086_s16, %s1467_s5 }
  0x33   : > { %466 = vperm.xlu0 %955, %v851_v6   ;;  %p1093_p0 = scmp.lt.s32.totalorder %s1091_s27, %s1087_s17 }
  0x34   : > { %p1089_p11 = pnand %p1088_p7, %p1243_p8 }
  0x35   : > { %p1094_p1 = por %p1093_p0, %p1092_p13 }
  0x36   : > { %p1090_p12 = pneg %p1089_p11 }
  0x37   : > { %v368_v7 = vld.sshfl [vmem:[#allocation1] sm:$0xff pattern:$0x75316420]  ;;  %v369_v8 = vld.sshfl [vmem:[#allocation1 + $0x8] sm:$0xff pattern:$0x75316420] }
  0x38   : > { %845 = vmatpush.msk.msra.mxu0 %vm374_vm0, %v368_v7  ;;  %847 = vmatpush.msk.msra.mxu1 %vm374_vm0, %v369_v8  ;;  %470 = vst [vmem:[#allocation1] ss:$2 sm:$0xff] %v459_v4  ;;  %p1095_p2 = pnand %p1094_p1, %p1090_p12 }
  0x39   : > { %846 = vmatmul.msk.f32.vlgmr.msra.gmra.mxu0 %vm370_vm1, %v359_v5  ;;  %848 = vmatmul.msk.f32.vlgmr.msra.gmra.mxu1 %vm370_vm1, %v359_v5 }
  0x3f   : > { %v471_v11 = vld.sshfl [vmem:[#allocation1] sm:$0xff pattern:$0x75316420]  ;;  %v472_v12 = vld.sshfl [vmem:[#allocation1 + $0x8] sm:$0xff pattern:$0x75316420] }
  0x40   : > { %852 = vmatpush.msk.msra.mxu2 %vm374_vm0, %v471_v11  ;;  %854 = vmatpush.msk.msra.mxu3 %vm374_vm0, %v472_v12  ;;  %573 = vst [vmem:[#allocation1] ss:$2 sm:$0xff] %v562_v9 }
  0x41   : > { %853 = vmatmul.msk.f32.vlgmr.msra.gmra.mxu2 %vm370_vm1, %v461_v10  ;;  %855 = vmatmul.msk.f32.vlgmr.msra.gmra.mxu3 %vm370_vm1, %v461_v10 }
  0x47   : > { %v574_v14 = vld.sshfl [vmem:[#allocation1] sm:$0xff pattern:$0x75316420]  ;;  %v575_v15 = vld.sshfl [vmem:[#allocation1 + $0x8] sm:$0xff pattern:$0x75316420] }
  0x48   : > { %859 = vmatpush.msk.msrb.mxu0 %vm374_vm0, %v574_v14  ;;  %861 = vmatpush.msk.msrb.mxu1 %vm374_vm0, %v575_v15 }
  0x49   : > { %860 = vmatmul.msk.f32.vlgmr.msrb.gmra.mxu0 %vm370_vm1, %v564_v13  ;;  %862 = vmatmul.msk.f32.vlgmr.msrb.gmra.mxu1 %vm370_vm1, %v564_v13 }
  0x9d   : > { %v364_v16 = vpop.permute.xlu0 %363  ;;  %v570_v27 = vpop.permute.xlu1 %569 }
  0xa5   : > { %v467_v30 = vpop.permute.xlu0 %466 }
  0xb6   : > { %v396_v17 = vpop.f32.mrf.mxu0  ;;  %v416_v18 = vpop.f32.mrf.mxu1 }
  0xb7   : > { %v1345_v19 = vadd.f32 %v396_v17, %v364_v16  ;;  %v1347_v20 = vadd.f32 %v416_v18, %v364_v16 }
  0xb9   : > { %v849_v21 = vmul.f32 -1.442695, %v1345_v19  ;;  %v850_v22 = vmul.f32 -1.442695, %v1347_v20 }
  0xbb   : > { %957 = vpow2.f32 %v849_v21 }
  0xbc   : > { %959 = vpow2.f32 %v850_v22 }
  0xc1   : > { %v958_v23 = vpop.eup %957 }
  0xc2   : > { %v960_v24 = vpop.eup %959  ;;  %v425_v25 = vadd.f32 1.0, %v958_v23 }
  0xc3   : > { %v1351_v26 = vadd.f32 1.0, %v960_v24 }
  0xc4   : > { %961 = vrcp.f32 %v425_v25  ;;  %v497_v28 = vpop.f32.mrf.mxu2  ;;  %v517_v29 = vpop.f32.mrf.mxu3  ;;  %vm432_vm2 = vweird.f32 %v425_v25  ;;  %v436_v55 = vand.u32 2147483647, %v425_v25  ;;  %v438_v56 = vand.u32 2147483648, %v425_v25 }
  0xc5   : > { %963 = vrcp.f32 %v1351_v26  ;;  %v1354_v31 = vadd.f32 %v497_v28, %v467_v30  ;;  %v1356_v32 = vadd.f32 %v517_v29, %v467_v30  ;;  %v451_v57 = vand.u32 2147483647, %v1351_v26 }
  0xc6   : > { %v600_v33 = vpop.f32.mrf.mxu0  ;;  %v620_v34 = vpop.f32.mrf.mxu1  ;;  %vm447_vm4 = vweird.f32 %v1351_v26  ;;  %v453_v63 = vand.u32 2147483648, %v1351_v26  ;;  %vm1381_vm7 = vcmp.eq.f32.partialorder %v436_v55, 8.507059e+37  ;;  %v439_v4 = vor.u32 1.1754944e-38, %v438_v56 }
  0xc7   : > { %v1358_v35 = vadd.f32 %v600_v33, %v570_v27  ;;  %v1360_v36 = vadd.f32 %v620_v34, %v570_v27  ;;  %v856_v37 = vmul.f32 -1.442695, %v1354_v31  ;;  %v857_v38 = vmul.f32 -1.442695, %v1356_v32 }
  0xc8   : > { %vm1389_vm9 = vcmp.eq.f32.partialorder %v451_v57, 8.507059e+37  ;;  %v454_v12 = vor.u32 1.1754944e-38, %v453_v63 }
  0xc9   : > { %v863_v39 = vmul.f32 -1.442695, %v1358_v35  ;;  %965 = vpow2.f32 %v856_v37  ;;  %v864_v41 = vmul.f32 -1.442695, %v1360_v36 }
  0xca   : > { %v962_v40 = vpop.eup %961  ;;  %967 = vpow2.f32 %v857_v38 }
  0xcb   : > { %v964_v42 = vpop.eup %963  ;;  %v428_v43 = vmul.f32 %v962_v40, %v425_v25  ;;  %969 = vpow2.f32 %v863_v39  ;;  %vm433_vm3 = vweird.f32 %v962_v40 }
  0xcc   : > { %v443_v44 = vmul.f32 %v964_v42, %v1351_v26  ;;  %971 = vpow2.f32 %v864_v41  ;;  %vm448_vm5 = vweird.f32 %v964_v42  ;;  %vm1376_vm6 = vmor %vm432_vm2, %vm433_vm3 }
  0xcd   : > { %v429_v46 = vsub.f32 1.0, %v428_v43  ;;  %vm1385_vm8 = vmor %vm447_vm4, %vm448_vm5 }
  0xce   : > { %v444_v47 = vsub.f32 1.0, %v443_v44 }
  0xcf   : > { %v966_v45 = vpop.eup %965  ;;  %v430_v53 = vmul.f32 %v962_v40, %v429_v46 }
  0xd0   : > { %v968_v48 = vpop.eup %967  ;;  %v526_v49 = vadd.f32 1.0, %v966_v45  ;;  %v445_v54 = vmul.f32 %v964_v42, %v444_v47 }
  0xd1   : > { %v527_v50 = vadd.f32 1.0, %v968_v48  ;;  %v970_v51 = vpop.eup %969  ;;  %v431_v60 = vadd.f32 %v962_v40, %v430_v53 }
  0xd2   : > { %973 = vrcp.f32 %v526_v49  ;;  %v972_v52 = vpop.eup %971  ;;  %v1368_v58 = vadd.f32 1.0, %v970_v51  ;;  %v446_v61 = vadd.f32 %v964_v42, %v445_v54  ;;  %v537_v11 = vand.u32 2147483647, %v526_v49 }
  0xd3   : > { %975 = vrcp.f32 %v527_v50  ;;  %v1370_v59 = vadd.f32 1.0, %v972_v52  ;;  %v435_v8 = vsel %vm1376_vm6, %v962_v40, %v431_v60  ;;  %v539_v13 = vand.u32 2147483648, %v526_v49 }
  0xd4   : > { %977 = vrcp.f32 %v1368_v58  ;;  %v450_v9 = vsel %vm1385_vm8, %v964_v42, %v446_v61  ;;  %v552_v15 = vand.u32 2147483647, %v527_v50  ;;  %vm533_vm10 = vweird.f32 %v526_v49 }
  0xd5   : > { %979 = vrcp.f32 %v1370_v59  ;;  %v554_v17 = vand.u32 2147483648, %v527_v50  ;;  %v440_v21 = vsel %vm1381_vm7, %v439_v4, %v435_v8  ;;  %v455_v22 = vsel %vm1389_vm9, %v454_v12, %v450_v9 }
  0xd6   : > { %vm1401_vm13 = vcmp.eq.f32.partialorder %v537_v11, 8.507059e+37  ;;  %vm548_vm14 = vweird.f32 %v527_v50  ;;  %v540_v28 = vor.u32 1.1754944e-38, %v539_v13  ;;  %vm553_vm1 = vcmp.eq.f32.partialorder %v552_v15, 8.507059e+37 }
  0xd7   : > { %v555_v34 = vor.u32 1.1754944e-38, %v554_v17  ;;  %v640_v38 = vand.u32 2147483647, %v1368_v58  ;;  %v642_v40 = vand.u32 2147483648, %v1368_v58  ;;  %v657_v42 = vand.u32 2147483648, %v1370_v59 }
  0xd8   : > { %v974_v62 = vpop.eup %973  ;;  %v655_v48 = vand.u32 2147483647, %v1370_v59  ;;  %vm636_vm5 = vweird.f32 %v1368_v58  ;;  %vm651_vm7 = vweird.f32 %v1370_v59 }
  0xd9   : > { %v976_v0 = vpop.eup %975  ;;  %v529_v2 = vmul.f32 %v974_v62, %v526_v49  ;;  %vm534_vm11 = vweird.f32 %v974_v62  ;;  %v458_v49 = vmul.f32 %v455_v22, %v1347_v20  ;;  %v643_v52 = vor.u32 1.1754944e-38, %v642_v40 }
  0xda   : > { %v544_v7 = vmul.f32 %v976_v0, %v527_v50  ;;  %v978_v18 = vpop.eup %977  ;;  %vm549_vm12 = vweird.f32 %v976_v0  ;;  %vm535_vm15 = vmor %vm533_vm10, %vm534_vm11  ;;  %vm641_vm8 = vcmp.eq.f32.partialorder %v640_v38, 8.507059e+37  ;;  %v658_v55 = vor.u32 1.1754944e-38, %v657_v42 }
  0xdb   : > { %v530_v10 = vsub.f32 1.0, %v529_v2  ;;  %v980_v24 = vpop.eup %979  ;;  %v632_v27 = vmul.f32 %v978_v18, %v1368_v58  ;;  %vm550_vm2 = vmor %vm548_vm14, %vm549_vm12  ;;  %vm637_vm3 = vweird.f32 %v978_v18  ;;  %vm656_vm10 = vcmp.eq.f32.partialorder %v655_v48, 8.507059e+37 }
  0xdc   : > { %v545_v14 = vsub.f32 1.0, %v544_v7  ;;  %v647_v30 = vmul.f32 %v980_v24, %v1370_v59  ;;  %vm652_vm4 = vweird.f32 %v980_v24  ;;  %vm638_vm6 = vmor %vm636_vm5, %vm637_vm3 }
  0xdd   : > { %v531_v16 = vmul.f32 %v974_v62, %v530_v10  ;;  %v633_v37 = vsub.f32 1.0, %v632_v27  ;;  %vm653_vm9 = vmor %vm651_vm7, %vm652_vm4 }
  0xde   : > { %v546_v23 = vmul.f32 %v976_v0, %v545_v14  ;;  %v648_v41 = vsub.f32 1.0, %v647_v30 }
  0xdf   : > { %v532_v25 = vadd.f32 %v974_v62, %v531_v16  ;;  %v634_v45 = vmul.f32 %v978_v18, %v633_v37 }
  0xe0   : > { %v547_v29 = vadd.f32 %v976_v0, %v546_v23  ;;  %v649_v47 = vmul.f32 %v980_v24, %v648_v41 }
  0xe1   : > { %v536_v33 = vsel %vm535_vm15, %v974_v62, %v532_v25  ;;  %v635_v50 = vadd.f32 %v978_v18, %v634_v45 }
  0xe2   : > { %v551_v39 = vsel %vm550_vm2, %v976_v0, %v547_v29  ;;  %v541_v43 = vsel %vm1401_vm13, %v540_v28, %v536_v33  ;;  %v650_v53 = vadd.f32 %v980_v24, %v649_v47 }
  0xe3   : > { %v556_v44 = vsel %vm553_vm1, %v555_v34, %v551_v39  ;;  %v558_v51 = vmul.f32 %v541_v43, %v1354_v31  ;;  %v639_v54 = vsel %vm638_vm6, %v978_v18, %v635_v50 }
  0xe4   : > { %v559_v46 = vmul.f32 %v556_v44, %v1356_v32  ;;  %v457_v32 = vmul.f32 %v440_v21, %v1345_v19  ;;  %v644_v20 = vsel %vm641_vm8, %v643_v52, %v639_v54  ;;  %v654_v57 = vsel %vm653_vm9, %v980_v24, %v650_v53 }
  0xe5   : > { %v659_v58 = vsel %vm656_vm10, %v658_v55, %v654_v57  ;;  %v661_v59 = vmul.f32 %v644_v20, %v1358_v35 }
  0xe6   : > { %v561_v56 = vadd.f32 %v559_v46, %v458_v49  ;;  %v560_v31 = vadd.f32 %v558_v51, %v457_v32  ;;  %v662_v60 = vmul.f32 %v659_v58, %v1360_v36 }
  0xe8   : > { %v664_v19 = vadd.f32 %v662_v60, %v561_v56  ;;  %v663_v61 = vadd.f32 %v661_v59, %v560_v31 }
  0xea   : > { %v667_v62 = vrot.slane %v664_v19, 4 }
  0xec   : > { %v668_v63 = vsel %vm374_vm0, %v663_v61, %v667_v62 }
  0xed   : > { %670 = vst [vmem:[%s344_s21] sm:$0xff] %v668_v63 }
  0xee   : > { %1098 = shalt.err (!%p1095_p2)
}
  0xef   : > { %882 = dma.vmem_to_hbm [thread:$0]  (%p1243_p8), %s688_s15, 128, %s690_s8, %s672_s11  }
  0xf0 PF: > { %s701_s9 = sand.u32 1, %s1137_s18   ;;  %p896_p4 = pnand %p831_p10, %p1250_p9 }
  0xf1   : > { %s702_s10 = scalar_lea.sflag [#allocation4], %s701_s9 }
  0xf2   : > { %p897_p5 = pneg %p896_p4 }
  0xf4   : > { %1132 = dma.done.wait (%p897_p5), %s702_s10, 128  }
  0xf5   : > { %1134 = vsyncadd (%p897_p5), %s702_s10, 4294967168  ;;  %s22_s23 = sadd.s32 1, %s1157_s23   ;;  %s1486_s30 = sld [smem:[#allocation12_spill]] }
  0xf6   : > { %p19_p3 = scmp.ge.s32.totalorder %s22_s23, 4   ;;  %s1487_s18 = smov %s1141_s19 }
  0xf7   : > { %s1488_s19 = smov %s1145_s20  ;;  %s1489_s20 = smov %s1255_s7 }
  0xf8   : > { %s1490_s21 = smov %s1153_s22  ;;  %21 = sbr.rel (!%p19_p3) target bundleno = 7 (0x7), region = 108 }
  0xfb   : > { %s1491_s22 = smov %s1486_s30 }
  0xfd   :  { %708 = vsyncpa [#allocation3], 1 }
  0xfe   :  { %710 = vsyncpa [#allocation3 + $0x1], 1 }
  0xff   :  { %711 = vsyncpa [#allocation6], 1 }
 0x100   :  { %713 = vsyncpa [#allocation6 + $0x1], 1 }
 0x101   :  { %714 = vsyncpa [#allocation4], 1 }
 0x102   :  { %716 = vsyncpa [#allocation4 + $0x1], 1 }

</bundles_post_ra>
